<compile_context>
chip_gen: v7x
topology: tpu7x:2x2x1
jax: 0.10.0
libtpu: 0.0.40
codegen_flags: <defaults>
</compile_context>

<pallas_src>
import functools

import jax
import jax.numpy as jnp
from jax.experimental import pallas as pl
from jax.experimental.pallas import tpu as pltpu

DENSITY = 985.0


# --------------------------------------------------------------------------
# Chip queries (best effort, safe fallbacks).
# --------------------------------------------------------------------------
def _vmem_capacity_bytes(default=64 << 20):
    try:
        info = pltpu.get_tpu_info()
        for name in ("vmem_capacity_bytes", "vmem_bytes", "vmem_size_bytes"):
            v = getattr(info, name, None)
            if v:
                return int(v)
    except Exception:
        pass
    return default  # conservative (v7x per-core size)


def _default_core_splits():
    try:
        info = pltpu.get_tpu_info()
        for name in ("num_cores", "core_count", "num_tensorcores",
                     "num_cores_per_chip"):
            v = getattr(info, name, None)
            if v and int(v) >= 2:
                return 2
    except Exception:
        pass
    return 1  # v5e / v6e: single TensorCore -> no megacore split


# --------------------------------------------------------------------------
# Pallas kernel: per-chunk partial signed-volume sums over faces.
# Grid = (n_outer, n_inner); outer axis is "parallel" (megacore split on v7x),
# inner axis is the "arbitrary" face reduction.
# Operand block: (9, B_rows, f_tile) -- the 9 coordinate planes sit on the
# untiled leading axis, faces are lane-dense.
# --------------------------------------------------------------------------
def _mass_kernel(tris_ref, out_ref, acc_ref, *, f_tile, num_cols, n_tiles):
    o = pl.program_id(0)
    i = pl.program_id(1)
    n_inner = pl.num_programs(1)

    @pl.when(i == 0)
    def _():
        acc_ref[...] = jnp.zeros_like(acc_ref)

    # plane k = vertex*3 + coord
    x0, y0, z0 = tris_ref[0], tris_ref[1], tris_ref[2]
    x1, y1, z1 = tris_ref[3], tris_ref[4], tris_ref[5]
    x2, y2, z2 = tris_ref[6], tris_ref[7], tris_ref[8]

    # Signed volume, cross-product form (algebraically identical to the PyTorch
    # expression): 9 mul + 5 add/sub per face.
    vol = (x0 * (y1 * z2 - y2 * z1)
           + x1 * (y2 * z0 - y0 * z2)
           + x2 * (y0 * z1 - y1 * z0))            # (B_rows, f_tile)

    last_valid = num_cols - (n_tiles - 1) * f_tile   # static Python int in [1, f_tile]

    if last_valid == f_tile:
        # Face axis divides evenly: no mask ops anywhere (pure VALU add).
        acc_ref[...] += vol
    else:
        is_ragged = (o * n_inner + i) == (n_tiles - 1)

        @pl.when(jnp.logical_not(is_ragged))
        def _():
            acc_ref[...] += vol                   # steady-state path: no mask

        @pl.when(is_ragged)
        def _():
            # Ragged last tile only: select (not multiply) so pad-lane garbage
            # (possibly NaN/Inf) cannot propagate.
            lane = jax.lax.broadcasted_iota(jnp.int32, vol.shape, 1)
            acc_ref[...] += jnp.where(lane < last_valid, vol, 0.0)

    @pl.when(i == n_inner - 1)
    def _():
        # Single cross-lane reduction + narrow store per reduction chunk.
        out_ref[...] = jnp.sum(acc_ref[...], axis=-1, keepdims=True)[None]


# --------------------------------------------------------------------------
# Tile sizing.
# --------------------------------------------------------------------------
def _choose_f_tile(b_rows, num_cols):
    """Largest face tile whose double-buffered input block plus the lane-dense
    accumulator fits a chip-aware VMEM budget."""
    cap = _vmem_capacity_bytes()
    budget = int(cap * 0.30)                       # headroom for out/pipe/etc.
    max_tile = 32768 if cap >= (96 << 20) else 16384   # v5e/v6e vs v7x
    b_pad = ((b_rows + 7) // 8) * 8
    bytes_per_col = (2 * 9 + 1) * b_pad * 4        # 2x input buffers + 1x acc, f32
    fit = max(512, (budget // bytes_per_col) // 512 * 512)
    needed = ((num_cols + 127) // 128) * 128
    return int(min(needed, fit, max_tile))


def compute_mass_pallas(triangles: jax.Array,
                        f_tile: int | None = None,
                        core_splits: int | None = None) -> jax.Array:
    """triangles: (B, F, 3, 3) float32 -> mass: (B,) float32."""
    B, F = int(triangles.shape[0]), int(triangles.shape[1])
    assert triangles.shape[2:] == (3, 3)

    # Sublane fold: for small batch, fold a factor s of the face axis into the
    # sublane (batch-row) axis.  Free, contiguous reshape of the (9,B,F) operand.
    if B >= 8:
        s = 1
    else:
        s = next((c for c in (8, 4, 2) if F % c == 0), 1)
    b_rows = B * s
    num_cols = F // s                                  # faces per sublane row

    # Repack to (9, B*s, F/s): coordinate planes on the untiled leading axis,
    # faces lane-dense.  allow_input_fusion lets XLA try to fuse this transpose
    # into the pallas_call operand (avoids an extra HBM round trip).
    # TODO(synk): ideally the producer emits this layout directly.
    t9 = jnp.transpose(triangles.reshape(B, F, 9), (2, 0, 1)).reshape(9, b_rows, num_cols)

    if f_tile is None:
        f_tile = _choose_f_tile(b_rows, num_cols)
    f_tile = max(128, (int(f_tile) // 128) * 128)      # lane alignment

    n_tiles = -(-num_cols // f_tile)

    if core_splits is None:
        core_splits = _default_core_splits()
    # Only split the outer axis when it divides the tile count evenly, so no
    # duplicated (fully masked) tile is ever fetched or computed.
    n_outer = core_splits if (core_splits > 1 and n_tiles % core_splits == 0) else 1
    n_inner = n_tiles // n_outer

    b_pad = ((b_rows + 7) // 8) * 8
    tile_bytes = 9 * b_pad * f_tile * 4
    acc_bytes = b_pad * f_tile * 4
    vmem_need = 2 * tile_bytes + acc_bytes
    vmem_limit = int(min(max(vmem_need + (4 << 20), 32 << 20), 128 << 20))

    kernel = functools.partial(_mass_kernel, f_tile=f_tile,
                               num_cols=num_cols, n_tiles=n_tiles)

    partial_sums = pl.pallas_call(
        kernel,
        out_shape=jax.ShapeDtypeStruct((n_outer, b_rows, 1), jnp.float32),
        grid_spec=pltpu.PrefetchScalarGridSpec(
            num_scalar_prefetch=0,
            grid=(n_outer, n_inner),
            in_specs=[pl.BlockSpec((9, b_rows, f_tile),
                                   lambda o, i: (0, 0, o * n_inner + i))],
            out_specs=pl.BlockSpec((1, b_rows, 1), lambda o, i: (o, 0, 0)),
            scratch_shapes=[pltpu.VMEM((b_rows, f_tile), jnp.float32)],
        ),
        compiler_params=pltpu.CompilerParams(
            dimension_semantics=("parallel", "arbitrary"),
            vmem_limit_bytes=vmem_limit,
            allow_input_fusion=[True]),
        cost_estimate=pl.CostEstimate(
            flops=16 * B * F,
            transcendentals=0,
            bytes_accessed=36 * B * F + 4 * n_outer * b_rows),
    )(t9)

    # Combine partial sums over the outer chunks and the sublane-fold groups.
    total = jnp.sum(partial_sums.reshape(n_outer, B, s), axis=(0, 2))   # (B,)
    return jnp.abs(total) / 6.0 * DENSITY


# --------------------------------------------------------------------------
# BodyMeasurements: parameters (barycentric coords + face indices) are
# synthesized deterministically in-script instead of loading a yaml file.
# --------------------------------------------------------------------------
class BodyMeasurementsPallas:
    DENSITY = DENSITY

    def __init__(self, head_top_face_idx, left_heel_face_idx,
                 head_top_bc, left_heel_bc):
        self.head_top_face_idx = int(head_top_face_idx)
        self.left_heel_face_idx = int(left_heel_face_idx)
        self.head_top_bc = jnp.asarray(head_top_bc, dtype=jnp.float32)    # (3,)
        self.left_heel_bc = jnp.asarray(left_heel_bc, dtype=jnp.float32)  # (3,)

    def compute_height(self, triangles: jax.Array):
        # triangles: (B, F, 3, 3). Plain-JAX glue (only two faces involved).
        head_top_tri = triangles[:, self.head_top_face_idx]     # (B, 3, 3)
        left_heel_tri = triangles[:, self.left_heel_face_idx]   # (B, 3, 3)
        head_top = (head_top_tri * self.head_top_bc.reshape(1, 3, 1)).sum(axis=1)
        left_heel = (left_heel_tri * self.left_heel_bc.reshape(1, 3, 1)).sum(axis=1)
        height = jnp.abs(head_top[:, 1] - left_heel[:, 1])       # (B,)
        points = jnp.stack([head_top, left_heel], axis=0)        # (2, B, 3)
        return height, points

    def __call__(self, triangles: jax.Array,
                 compute_mass: bool = True, compute_height: bool = True,
                 f_tile: int | None = None):
        measurements = {}
        if compute_mass:
            measurements['mass'] = {
                'tensor': compute_mass_pallas(triangles, f_tile=f_tile)}
        if compute_height:
            h, pts = self.compute_height(triangles)
            measurements['height'] = {'tensor': h, 'points': pts}
        return measurements


# --------------------------------------------------------------------------
# Pure-JAX reference for correctness checking.
# --------------------------------------------------------------------------
def _mass_ref(triangles):
    x = triangles[:, :, :, 0]
    y = triangles[:, :, :, 1]
    z = triangles[:, :, :, 2]
    vol = (-x[:, :, 2] * y[:, :, 1] * z[:, :, 0]
           + x[:, :, 1] * y[:, :, 2] * z[:, :, 0]
           + x[:, :, 2] * y[:, :, 0] * z[:, :, 1]
           - x[:, :, 0] * y[:, :, 2] * z[:, :, 1]
           - x[:, :, 1] * y[:, :, 0] * z[:, :, 2]
           + x[:, :, 0] * y[:, :, 1] * z[:, :, 2])
    return jnp.abs(vol.sum(axis=1)) / 6.0 * DENSITY


if __name__ == "__main__":
    key = jax.random.PRNGKey(0)
    k1, k2, k3, k4 = jax.random.split(key, 4)

    head_top_bc = jnp.array([0.2, 0.3, 0.5], dtype=jnp.float32)
    left_heel_bc = jnp.array([0.6, 0.1, 0.3], dtype=jnp.float32)
    module = BodyMeasurementsPallas(
        head_top_face_idx=5, left_heel_face_idx=17,
        head_top_bc=head_top_bc, left_heel_bc=left_heel_bc)

    # --- Test 1: small batch (sublane fold s=8), single ragged tile ---------
    B, F = 2, 200
    triangles = jax.random.normal(k1, (B, F, 3, 3), dtype=jnp.float32)

    out = module(triangles)
    mass = jax.block_until_ready(out['mass']['tensor'])
    height = jax.block_until_ready(out['height']['tensor'])
    points = jax.block_until_ready(out['height']['points'])

    mass_ref = _mass_ref(triangles)
    head_tri = triangles[:, 5]
    heel_tri = triangles[:, 17]
    head_pt = (head_tri * head_top_bc.reshape(1, 3, 1)).sum(axis=1)
    heel_pt = (heel_tri * left_heel_bc.reshape(1, 3, 1)).sum(axis=1)
    height_ref = jnp.abs(head_pt[:, 1] - heel_pt[:, 1])

    assert mass.shape == (B,) and height.shape == (B,) and points.shape == (2, B, 3)
    assert jnp.allclose(mass, mass_ref, rtol=1e-4, atol=1e-2)
    assert jnp.allclose(height, height_ref, rtol=1e-5, atol=1e-5)

    # --- Test 2: even tile count -> exercises the 2-way outer ("parallel")
    #     split with no ragged tile (mask statically compiled out). ----------
    B2, F2 = 2, 2048
    triangles2 = jax.random.normal(k2, (B2, F2, 3, 3), dtype=jnp.float32)
    mass2 = jax.block_until_ready(
        compute_mass_pallas(triangles2, f_tile=128, core_splits=2))
    assert mass2.shape == (B2,)
    assert jnp.allclose(mass2, _mass_ref(triangles2), rtol=1e-4, atol=1e-2)

    # --- Test 3: odd tile count + ragged last tile (fold s=4, outer split
    #     auto-disabled because it would not divide evenly). -----------------
    B3, F3 = 3, 1300
    triangles3 = jax.random.normal(k3, (B3, F3, 3, 3), dtype=jnp.float32)
    mass3 = jax.block_until_ready(
        compute_mass_pallas(triangles3, f_tile=128, core_splits=2))
    assert mass3.shape == (B3,)
    assert jnp.allclose(mass3, _mass_ref(triangles3), rtol=1e-4, atol=1e-2)

    # --- Test 4: batch >= 8 -> no sublane fold (s=1), single ragged tile. ---
    B4, F4 = 8, 200
    triangles4 = jax.random.normal(k4, (B4, F4, 3, 3), dtype=jnp.float32)
    mass4 = jax.block_until_ready(compute_mass_pallas(triangles4))
    assert mass4.shape == (B4,)
    assert jnp.allclose(mass4, _mass_ref(triangles4), rtol=1e-4, atol=1e-2)

    print("KERNEL_OK")
</pallas_src>

<mosaic_0001>
module attributes {stable_mosaic.version = 11 : i64} {
  func.func @_mass_kernel(%arg0: i32, %arg1: i32, %arg2: memref<9x16x128xf32, #tpu.memory_space<vmem>>, %arg3: memref<1x16x1xf32, #tpu.memory_space<vmem>>, %arg4: memref<16x128xf32, #tpu.memory_space<vmem>>) attributes {dimension_semantics = [#tpu.dimension_semantics<parallel>, #tpu.dimension_semantics<arbitrary>], iteration_bounds = array<i64: 1, 1>, scalar_prefetch = 0 : i64, scratch_operands = 1 : i64, tpu.core_type = #tpu.core_type<tc>, window_params = [{transform_indices = @transform_0, window_bounds = array<i64: 9, 16, 128>}, {transform_indices = @transform_1, window_bounds = array<i64: 1, 16, 1>}]} {
    %c0_i32 = arith.constant 0 : i32
    %0 = arith.cmpi eq, %arg1, %c0_i32 : i32
    %1 = arith.extui %0 : i1 to i32
    %c0_i32_0 = arith.constant 0 : i32
    %2 = arith.cmpi ne, %1, %c0_i32_0 : i32
    scf.if %2 {
      %cst = arith.constant 0.000000e+00 : f32
      %46 = vector.broadcast %cst : f32 to vector<16x128xf32>
      %c0_24 = arith.constant 0 : index
      %c0_25 = arith.constant 0 : index
      %47 = vector.load %arg4[%c0_24, %c0_25] : memref<16x128xf32, #tpu.memory_space<vmem>>, vector<16x128xf32>
      tpu.vector_store %arg4[%c0_24, %c0_25], %46 {strides = array<i32>} : memref<16x128xf32, #tpu.memory_space<vmem>>, vector<16x128xf32>,
    } else {
    }
    %c0 = arith.constant 0 : index
    %c0_1 = arith.constant 0 : index
    %c0_2 = arith.constant 0 : index
    %3 = vector.load %arg2[%c0, %c0_1, %c0_2] : memref<9x16x128xf32, #tpu.memory_space<vmem>>, vector<1x16x128xf32>
    %4 = vector.shape_cast %3 : vector<1x16x128xf32> to vector<16x128xf32>
    %c1 = arith.constant 1 : index
    %c0_3 = arith.constant 0 : index
    %c0_4 = arith.constant 0 : index
    %5 = vector.load %arg2[%c1, %c0_3, %c0_4] : memref<9x16x128xf32, #tpu.memory_space<vmem>>, vector<1x16x128xf32>
    %6 = vector.shape_cast %5 : vector<1x16x128xf32> to vector<16x128xf32>
    %c2 = arith.constant 2 : index
    %c0_5 = arith.constant 0 : index
    %c0_6 = arith.constant 0 : index
    %7 = vector.load %arg2[%c2, %c0_5, %c0_6] : memref<9x16x128xf32, #tpu.memory_space<vmem>>, vector<1x16x128xf32>
    %8 = vector.shape_cast %7 : vector<1x16x128xf32> to vector<16x128xf32>
    %c3 = arith.constant 3 : index
    %c0_7 = arith.constant 0 : index
    %c0_8 = arith.constant 0 : index
    %9 = vector.load %arg2[%c3, %c0_7, %c0_8] : memref<9x16x128xf32, #tpu.memory_space<vmem>>, vector<1x16x128xf32>
    %10 = vector.shape_cast %9 : vector<1x16x128xf32> to vector<16x128xf32>
    %c4 = arith.constant 4 : index
    %c0_9 = arith.constant 0 : index
    %c0_10 = arith.constant 0 : index
    %11 = vector.load %arg2[%c4, %c0_9, %c0_10] : memref<9x16x128xf32, #tpu.memory_space<vmem>>, vector<1x16x128xf32>
    %12 = vector.shape_cast %11 : vector<1x16x128xf32> to vector<16x128xf32>
    %c5 = arith.constant 5 : index
    %c0_11 = arith.constant 0 : index
    %c0_12 = arith.constant 0 : index
    %13 = vector.load %arg2[%c5, %c0_11, %c0_12] : memref<9x16x128xf32, #tpu.memory_space<vmem>>, vector<1x16x128xf32>
    %14 = vector.shape_cast %13 : vector<1x16x128xf32> to vector<16x128xf32>
    %c6 = arith.constant 6 : index
    %c0_13 = arith.constant 0 : index
    %c0_14 = arith.constant 0 : index
    %15 = vector.load %arg2[%c6, %c0_13, %c0_14] : memref<9x16x128xf32, #tpu.memory_space<vmem>>, vector<1x16x128xf32>
    %16 = vector.shape_cast %15 : vector<1x16x128xf32> to vector<16x128xf32>
    %c7 = arith.constant 7 : index
    %c0_15 = arith.constant 0 : index
    %c0_16 = arith.constant 0 : index
    %17 = vector.load %arg2[%c7, %c0_15, %c0_16] : memref<9x16x128xf32, #tpu.memory_space<vmem>>, vector<1x16x128xf32>
    %18 = vector.shape_cast %17 : vector<1x16x128xf32> to vector<16x128xf32>
    %c8 = arith.constant 8 : index
    %c0_17 = arith.constant 0 : index
    %c0_18 = arith.constant 0 : index
    %19 = vector.load %arg2[%c8, %c0_17, %c0_18] : memref<9x16x128xf32, #tpu.memory_space<vmem>>, vector<1x16x128xf32>
    %20 = vector.shape_cast %19 : vector<1x16x128xf32> to vector<16x128xf32>
    %21 = arith.mulf %12, %20 : vector<16x128xf32>
    %22 = arith.mulf %18, %14 : vector<16x128xf32>
    %23 = arith.subf %21, %22 : vector<16x128xf32>
    %24 = arith.mulf %4, %23 : vector<16x128xf32>
    %25 = arith.mulf %18, %8 : vector<16x128xf32>
    %26 = arith.mulf %6, %20 : vector<16x128xf32>
    %27 = arith.subf %25, %26 : vector<16x128xf32>
    %28 = arith.mulf %10, %27 : vector<16x128xf32>
    %29 = arith.addf %24, %28 : vector<16x128xf32>
    %30 = arith.mulf %6, %14 : vector<16x128xf32>
    %31 = arith.mulf %12, %8 : vector<16x128xf32>
    %32 = arith.subf %30, %31 : vector<16x128xf32>
    %33 = arith.mulf %16, %32 : vector<16x128xf32>
    %34 = arith.addf %29, %33 : vector<16x128xf32>
    %c1_i32 = arith.constant 1 : i32
    %35 = arith.muli %arg0, %c1_i32 : i32
    %36 = arith.addi %35, %arg1 : i32
    %c0_i32_19 = arith.constant 0 : i32
    %37 = arith.cmpi eq, %36, %c0_i32_19 : i32
    %true = arith.constant true
    %38 = arith.xori %37, %true : i1
    %39 = arith.extui %38 : i1 to i32
    %c0_i32_20 = arith.constant 0 : i32
    %40 = arith.cmpi ne, %39, %c0_i32_20 : i32
    scf.if %40 {
      %c0_24 = arith.constant 0 : index
      %c0_25 = arith.constant 0 : index
      %46 = vector.load %arg4[%c0_24, %c0_25] : memref<16x128xf32, #tpu.memory_space<vmem>>, vector<16x128xf32>
      %47 = arith.addf %46, %34 : vector<16x128xf32>
      %c0_26 = arith.constant 0 : index
      %c0_27 = arith.constant 0 : index
      %48 = vector.load %arg4[%c0_26, %c0_27] : memref<16x128xf32, #tpu.memory_space<vmem>>, vector<16x128xf32>
      tpu.vector_store %arg4[%c0_26, %c0_27], %47 {strides = array<i32>} : memref<16x128xf32, #tpu.memory_space<vmem>>, vector<16x128xf32>,
    } else {
    }
    %41 = arith.extui %37 : i1 to i32
    %c0_i32_21 = arith.constant 0 : i32
    %42 = arith.cmpi ne, %41, %c0_i32_21 : i32
    scf.if %42 {
      %46 = tpu.iota {dimensions = array<i32: 1>} : vector<16x128xi32>
      %c0_24 = arith.constant 0 : index
      %c0_25 = arith.constant 0 : index
      %47 = vector.load %arg4[%c0_24, %c0_25] : memref<16x128xf32, #tpu.memory_space<vmem>>, vector<16x128xf32>
      %c25_i32 = arith.constant 25 : i32
      %48 = vector.broadcast %c25_i32 : i32 to vector<16x128xi32>
      %49 = arith.cmpi slt, %46, %48 : vector<16x128xi32>
      %cst = arith.constant 0.000000e+00 : f32
      %50 = vector.broadcast %cst : f32 to vector<16x128xf32>
      %51 = arith.select %49, %34, %50 : vector<16x128xi1>, vector<16x128xf32>
      %52 = arith.addf %47, %51 : vector<16x128xf32>
      %c0_26 = arith.constant 0 : index
      %c0_27 = arith.constant 0 : index
      %53 = vector.load %arg4[%c0_26, %c0_27] : memref<16x128xf32, #tpu.memory_space<vmem>>, vector<16x128xf32>
      tpu.vector_store %arg4[%c0_26, %c0_27], %52 {strides = array<i32>} : memref<16x128xf32, #tpu.memory_space<vmem>>, vector<16x128xf32>,
    } else {
    }
    %c0_i32_22 = arith.constant 0 : i32
    %43 = arith.cmpi eq, %arg1, %c0_i32_22 : i32
    %44 = arith.extui %43 : i1 to i32
    %c0_i32_23 = arith.constant 0 : i32
    %45 = arith.cmpi ne, %44, %c0_i32_23 : i32
    scf.if %45 {
      %c0_24 = arith.constant 0 : index
      %c0_25 = arith.constant 0 : index
      %46 = vector.load %arg4[%c0_24, %c0_25] : memref<16x128xf32, #tpu.memory_space<vmem>>, vector<16x128xf32>
      %cst = arith.constant dense<0.000000e+00> : vector<16xf32>
      %47 = vector.multi_reduction <add>, %46, %cst [1] : vector<16x128xf32> to vector<16xf32>
      %48 = vector.shape_cast %47 : vector<16xf32> to vector<16x1xf32>
      %49 = vector.shape_cast %48 : vector<16x1xf32> to vector<1x16x1xf32>
      %c0_26 = arith.constant 0 : index
      %c0_27 = arith.constant 0 : index
      %c0_28 = arith.constant 0 : index
      %50 = vector.load %arg3[%c0_26, %c0_27, %c0_28] : memref<1x16x1xf32, #tpu.memory_space<vmem>>, vector<1x16x1xf32>
      tpu.vector_store %arg3[%c0_26, %c0_27, %c0_28], %49 {strides = array<i32>} : memref<1x16x1xf32, #tpu.memory_space<vmem>>, vector<1x16x1xf32>,
    } else {
    }
    return
  }
  func.func @transform_0(%arg0: i32, %arg1: i32) -> (i32, i32, i32) {
    %c1_i32 = arith.constant 1 : i32
    %0 = arith.muli %arg0, %c1_i32 : i32
    %1 = arith.addi %0, %arg1 : i32
    %c0_i32 = arith.constant 0 : i32
    %c0_i32_0 = arith.constant 0 : i32
    %c0_i32_1 = arith.constant 0 : i32
    return %c0_i32, %c0_i32_0, %1 : i32, i32, i32
  }
  func.func @transform_1(%arg0: i32, %arg1: i32) -> (i32, i32, i32) {
    %c0_i32 = arith.constant 0 : i32
    %c0_i32_0 = arith.constant 0 : i32
    %c0_i32_1 = arith.constant 0 : i32
    return %arg0, %c0_i32, %c0_i32_0 : i32, i32, i32
  }
}

</mosaic_0001>

<bundles_post_ra>
// kernel: tpu_custom_call.1
= control target key start
LH: loop header
LB: loop body
LE: loop exit
PB: predicated region body
PF: predicated region fallthrough
CT: control target
= control target key end

     0   :  { %6 = vsyncpa [#allocation4], 0  ;;  %s156_s6 = smov [#allocation3]   ;;  %s187_s0 = inlined_call_operand.hbm [shape: f32[9,16,25], index: 0, kind: input, shape index: {}]   ;;  %s188_s1 = inlined_call_operand.vmem [shape: f32[1,16,1], index: 1, kind: output, shape index: {}]  }
   0x1   :  { %s15_s7 = sshll.u32 %s156_s6, 4  ;;  %s132_s10 = scalar_lea.hbm %s187_s0, 2304  ;;  %s16_s7 = int_to_ptr.vmem [resolvable:$true] %s15_s7 }
   0x2   :  { %p133_p0 = scmp.ne.s32.totalorder %s187_s0, %s132_s10  ;;  %p136_p1 = scmp.lt.u32.totalorder %s132_s10, %s187_s0 }
   0x4   :  { %p138_p2 = pnand %p136_p1, %p133_p0 }
   0x6   :  { %141 = shalt.err (!%p138_p2)
}
   0x7   :  { %s142_s15 = scalar_lea.vmem %s16_s7, 2304  ;;  %p147_p4 = scmp.lt.s32.totalorder %s16_s7, %s16_s7 }
   0x8   :  { %p143_p3 = scmp.ne.s32.totalorder %s16_s7, %s142_s15  ;;  %p148_p5 = scmp.lt.s32.totalorder %s142_s15, %s142_s15 }
   0xa   :  { %p149_p6 = por %p148_p5, %p147_p4 }
   0xc   :  { %p150_p7 = pnand %p149_p6, %p143_p3 }
   0xe   :  { %153 = shalt.err (!%p150_p7)
}
   0xf   :  { %s157_s16 = smov 128   ;;  %s158_s17 = smov 8  }
  0x10   :  { %21 = dma.hbm_to_vmem [thread:$0]  %s187_s0, 2304, %s16_s7, [#allocation4], %s157_s16, %s157_s16, %s158_s17  }
  0x11   :  { %154 = dma.done.wait [#allocation4], 2304  }
  0x12   :  { %155 = vsyncadd [#allocation4], 4294964992  ;;  %v35_v0 = vld [vmem:[#allocation3 + $0x10] sm:$0xff]  ;;  %v38_v1 = vld [vmem:[#allocation3 + $0x20] sm:$0xff]  ;;  %v101_v2 = vlaneseq  ;;  %vm121_vm1 = vcmask 7168  }
  0x13   :  { %v44_v3 = vld [vmem:[#allocation3 + $0x40] sm:$0xff]  ;;  %v47_v4 = vld [vmem:[#allocation3 + $0x50] sm:$0xff]  ;;  %v39_v16 = vld [vmem:[#allocation3 + $0x28] sm:$0xff] }
  0x14   :  { %v32_v5 = vld [vmem:[#allocation3] sm:$0xff]  ;;  %v53_v6 = vld [vmem:[#allocation3 + $0x70] sm:$0xff]  ;;  %v76_v8 = vmul.f32 %v47_v4, %v35_v0  ;;  %v78_v9 = vmul.f32 %v44_v3, %v38_v1  ;;  %v102_v18 = vand.u32 127, %v101_v2  ;;  %v36_v19 = vld [vmem:[#allocation3 + $0x18] sm:$0xff] }
  0x15   :  { %v56_v7 = vld [vmem:[#allocation3 + $0x80] sm:$0xff]  ;;  %v41_v10 = vld [vmem:[#allocation3 + $0x30] sm:$0xff]  ;;  %v60_v13 = vmul.f32 %v53_v6, %v47_v4  ;;  %v66_v14 = vmul.f32 %v53_v6, %v38_v1  ;;  %v45_v20 = vld [vmem:[#allocation3 + $0x48] sm:$0xff] }
  0x16   :  { %v50_v11 = vld [vmem:[#allocation3 + $0x60] sm:$0xff]  ;;  %v58_v12 = vmul.f32 %v56_v7, %v44_v3  ;;  %v68_v15 = vmul.f32 %v56_v7, %v35_v0  ;;  %v80_v17 = vsub.f32 %v76_v8, %v78_v9  ;;  %v48_v21 = vld [vmem:[#allocation3 + $0x58] sm:$0xff]  ;;  %v57_v25 = vld [vmem:[#allocation3 + $0x88] sm:$0xff]  ;;  %v79_v27 = vmul.f32 %v45_v20, %v39_v16 }
  0x17   :  { %v54_v24 = vld [vmem:[#allocation3 + $0x78] sm:$0xff]  ;;  %v77_v26 = vmul.f32 %v48_v21, %v36_v19  ;;  %v59_v29 = vmul.f32 %v57_v25, %v45_v20  ;;  %v33_v34 = vld [vmem:[#allocation3 + $0x8] sm:$0xff]  ;;  %v69_v35 = vmul.f32 %v57_v25, %v36_v19  ;;  %vm105_vm0 = vcmp.lt.s32.totalorder %v102_v18, 25 }
  0x18   :  { %v62_v22 = vsub.f32 %v58_v12, %v60_v13  ;;  %v70_v23 = vsub.f32 %v66_v14, %v68_v15  ;;  %v82_v28 = vmul.f32 %v80_v17, %v50_v11  ;;  %v61_v30 = vmul.f32 %v54_v24, %v48_v21  ;;  %v42_v37 = vld [vmem:[#allocation3 + $0x38] sm:$0xff]  ;;  %v51_v38 = vld [vmem:[#allocation3 + $0x68] sm:$0xff] }
  0x19   :  { %v67_v31 = vmul.f32 %v54_v24, %v39_v16  ;;  %v81_v36 = vsub.f32 %v77_v26, %v79_v27 }
  0x1a   :  { %v64_v32 = vmul.f32 %v62_v22, %v32_v5  ;;  %v72_v33 = vmul.f32 %v70_v23, %v41_v10  ;;  %v63_v39 = vsub.f32 %v59_v29, %v61_v30 }
  0x1b   :  { %v71_v41 = vsub.f32 %v67_v31, %v69_v35  ;;  %v83_v45 = vmul.f32 %v81_v36, %v51_v38 }
  0x1c   :  { %v74_v40 = vadd.f32 %v72_v33, %v64_v32  ;;  %v65_v42 = vmul.f32 %v63_v39, %v33_v34 }
  0x1d   :  { %v73_v44 = vmul.f32 %v71_v41, %v42_v37 }
  0x1e   :  { %v84_v43 = vadd.f32 %v82_v28, %v74_v40 }
  0x1f   :  { %v75_v47 = vadd.f32 %v73_v44, %v65_v42 }
  0x20   :  { %v106_v46 = vsel %vm105_vm0, %v84_v43, 0.0 }
  0x21   :  { %117 = vadd.xlane.f32.xlu0 %v106_v46  ;;  %v85_v48 = vadd.f32 %v83_v45, %v75_v47 }
  0x23   :  { %v107_v49 = vsel %vm105_vm0, %v85_v48, 0.0 }
  0x25   :  { %119 = vadd.xlane.f32.xlu0 %v107_v49 }
  0xae   :  { %v118_v50 = vpop.xlane.xlu0 %117 }
  0xaf   :  { %122 = vst.msk [vmem:[%s188_s1] sm:$0xff] %vm121_vm1, %v118_v50 }
  0xb2   :  { %v120_v51 = vpop.xlane.xlu0 %119 }
  0xb3   :  { %123 = vst.msk [vmem:[%s188_s1 + $0x8] sm:$0xff] %vm121_vm1, %v120_v51 }
  0xb4   :  { %128 = vsyncpa [#allocation4], 1 }

</bundles_post_ra>
